<compile_context>
chip_gen: v7x
topology: tpu7x:2x2x1
jax: 0.10.0
libtpu: 0.0.40
codegen_flags: <defaults>
</compile_context>

<pallas_src>
import jax
import jax.numpy as jnp
from jax.experimental import pallas as pl
from jax.experimental.pallas import tpu as pltpu

IN_FEATURES = 2   # Dataset != 'HFBTP'  -> nn.Linear(2, 64)
H1 = 64
H2 = 8
OUT_FEATURES = 1


def _mlp_kernel(xT_ref, w1t_ref, b1_ref, w2t_ref, b2_ref, w3c_ref, b3_ref, o_ref):
    # Batch on lanes for the whole body -> lane-dense loads, VPU ops and stores.
    xT = xT_ref[...]                     # (IN_FEATURES, bm)
    w1t = w1t_ref[...]                   # (H1, IN_FEATURES)

    # Layer 1: Linear(2, 64).  K=2 -> two broadcast FMAs on the VPU instead of a
    # padded MXU pass.  (Dropout(0.1) -> identity, eval semantics.)
    h1 = w1t[:, 0:1] * xT[0:1, :]                          # (H1, bm)
    for k in range(1, IN_FEATURES):                        # static, tiny unroll
        h1 = h1 + w1t[:, k:k + 1] * xT[k:k + 1, :]
    h1 = jnp.maximum(h1 + b1_ref[...], 0.0)                # + b1, ReLU

    # Layer 2: Linear(64, 8) on the MXU: (H2, H1) @ (H1, bm) -> (H2, bm)
    h2 = jnp.dot(w2t_ref[...], h1, preferred_element_type=jnp.float32)
    h2 = jnp.maximum(h2 + b2_ref[...], 0.0)                # (Dropout identity) + ReLU

    # Layer 3: Linear(8, 1) as an 8-term weighted sublane reduction (no MXU).
    out = jnp.sum(w3c_ref[...] * h2, axis=0, keepdims=True) + b3_ref[...]   # (1, bm)

    # Lane-dense store: (1, bm) with bm a multiple of 128 -> unmasked vst.
    o_ref[...] = out.astype(o_ref.dtype)


def _round_up(n, m):
    return (n + m - 1) // m * m


def backbone_forward(x, params, *, bm=512):
    """x: (B, IN_FEATURES) float32.  Returns (B, 1) float32."""
    w1, b1, w2, b2, w3, b3 = params
    B = x.shape[0]

    # Batch-on-lane tiling: tile must be a multiple of 128 lanes.  Auto-shrink
    # for tiny batches so we don't pad a 16-row test to 512 rows needlessly.
    bm = min(bm, _round_up(B, 128))
    Bp = _round_up(B, bm)
    pad = Bp - B

    x32 = x.astype(jnp.float32)
    x_pad = jnp.pad(x32, ((0, pad), (0, 0))) if pad else x32
    xT = x_pad.T                                       # (IN_FEATURES, Bp), batch on lanes

    # One-time wrapper-side weight re-layouts (~600 floats total).
    w1t = w1.T                                         # (H1, IN_FEATURES)
    b1c = b1.reshape(H1, 1)
    w2t = w2.T                                         # (H2, H1)
    b2c = b2.reshape(H2, 1)
    w3c = w3.reshape(H2, OUT_FEATURES)                 # (H2, 1)
    b3c = b3.reshape(1, OUT_FEATURES)                  # (1, 1)

    grid = (Bp // bm,)

    # Weights / biases are tiny -> replicate full arrays to every grid step.
    def _rep(shape):
        return pl.BlockSpec(shape, lambda i: (0, 0))

    flops = 2 * Bp * (IN_FEATURES * H1 + H1 * H2 + H2 * OUT_FEATURES)
    bytes_accessed = 4 * (
        Bp * IN_FEATURES + Bp * OUT_FEATURES            # streaming x in, y out
        + IN_FEATURES * H1 + H1 + H1 * H2 + H2 + H2 * OUT_FEATURES + OUT_FEATURES
    )

    out = pl.pallas_call(
        _mlp_kernel,
        out_shape=jax.ShapeDtypeStruct((OUT_FEATURES, Bp), jnp.float32),
        grid_spec=pltpu.PrefetchScalarGridSpec(
            num_scalar_prefetch=0,
            grid=grid,
            in_specs=[
                pl.BlockSpec((IN_FEATURES, bm), lambda i: (0, i)),  # x tile (lanes = batch)
                _rep((H1, IN_FEATURES)),                            # w1^T
                _rep((H1, 1)),                                      # b1 column
                _rep((H2, H1)),                                     # w2^T
                _rep((H2, 1)),                                      # b2 column
                _rep((H2, OUT_FEATURES)),                           # w3 column
                _rep((1, OUT_FEATURES)),                            # b3
            ],
            out_specs=pl.BlockSpec((OUT_FEATURES, bm), lambda i: (0, i)),
        ),
        compiler_params=pltpu.CompilerParams(
            # Keep the batch axis "parallel" so v7x can shard steps over its 2 TCs.
            dimension_semantics=("parallel",),
            # Footprint is tiny (a few tens of KiB double-buffered); if bm is ever
            # raised aggressively, set vmem_limit_bytes here as a guardrail.
        ),
        cost_estimate=pl.CostEstimate(
            flops=flops, transcendentals=0, bytes_accessed=bytes_accessed),
    )(xT, w1t, b1c, w2t, b2c, w3c, b3c)

    # (1, Bp) and (Bp, 1) share the same contiguous layout -> metadata reshape,
    # then slice off the batch padding.
    return out.reshape(Bp, OUT_FEATURES)[:B]


def init_params(key):
    """Deterministic init mimicking nn.Linear's U(-1/sqrt(fan_in), 1/sqrt(fan_in))."""
    ks = jax.random.split(key, 6)

    def lin(kw, kb, fan_in, fan_out):
        bound = 1.0 / jnp.sqrt(jnp.float32(fan_in))
        w = jax.random.uniform(kw, (fan_in, fan_out), jnp.float32, -bound, bound)
        b = jax.random.uniform(kb, (fan_out,), jnp.float32, -bound, bound)
        return w, b

    w1, b1 = lin(ks[0], ks[1], IN_FEATURES, H1)
    w2, b2 = lin(ks[2], ks[3], H1, H2)
    w3, b3 = lin(ks[4], ks[5], H2, OUT_FEATURES)
    return (w1, b1, w2, b2, w3, b3)


def _reference(x, params):
    w1, b1, w2, b2, w3, b3 = params
    h1 = jnp.maximum(x @ w1 + b1, 0.0)
    h2 = jnp.maximum(h1 @ w2 + b2, 0.0)
    return h2 @ w3 + b3


if __name__ == "__main__":
    key = jax.random.PRNGKey(0)
    k_param, k_x = jax.random.split(key)

    params = init_params(k_param)

    # Ragged batch (not a multiple of the tile) to exercise the padding path;
    # with bm=512 this gives Bp=1024 -> 2 parallel grid steps.
    B = 1000
    x = jax.random.normal(k_x, (B, IN_FEATURES), jnp.float32)

    out = backbone_forward(x, params, bm=512)
    out = jax.block_until_ready(out)

    ref = _reference(x, params)
    assert out.shape == (B, OUT_FEATURES)
    assert jnp.allclose(out, ref, atol=1e-5, rtol=1e-5)

    # TODO(synk): dropout is identity here (eval mode); training-mode dropout would
    # use pltpu.prng_seed / pltpu.stateful_bernoulli inside the kernel.
    print("KERNEL_OK")
</pallas_src>

<mosaic_0001>
module attributes {stable_mosaic.version = 11 : i64} {
  func.func @_mlp_kernel(%arg0: i32, %arg1: memref<2x512xf32, #tpu.memory_space<vmem>>, %arg2: memref<64x2xf32, #tpu.memory_space<vmem>>, %arg3: memref<64x1xf32, #tpu.memory_space<vmem>>, %arg4: memref<8x64xf32, #tpu.memory_space<vmem>>, %arg5: memref<8x1xf32, #tpu.memory_space<vmem>>, %arg6: memref<8x1xf32, #tpu.memory_space<vmem>>, %arg7: memref<1x1xf32, #tpu.memory_space<vmem>>, %arg8: memref<1x512xf32, #tpu.memory_space<vmem>>) attributes {dimension_semantics = [#tpu.dimension_semantics<parallel>], iteration_bounds = array<i64: 2>, scalar_prefetch = 0 : i64, scratch_operands = 0 : i64, tpu.core_type = #tpu.core_type<tc>, window_params = [{transform_indices = @transform_0, window_bounds = array<i64: 2, 512>}, {pipeline_mode = #tpu.pipeline_mode<synchronous>, transform_indices = @transform_1, window_bounds = array<i64: 64, 2>}, {pipeline_mode = #tpu.pipeline_mode<synchronous>, transform_indices = @transform_2, window_bounds = array<i64: 64, 1>}, {pipeline_mode = #tpu.pipeline_mode<synchronous>, transform_indices = @transform_3, window_bounds = array<i64: 8, 64>}, {pipeline_mode = #tpu.pipeline_mode<synchronous>, transform_indices = @transform_4, window_bounds = array<i64: 8, 1>}, {pipeline_mode = #tpu.pipeline_mode<synchronous>, transform_indices = @transform_5, window_bounds = array<i64: 8, 1>}, {pipeline_mode = #tpu.pipeline_mode<synchronous>, transform_indices = @transform_6, window_bounds = array<i64: 1, 1>}, {transform_indices = @transform_7, window_bounds = array<i64: 1, 512>}]} {
    %c0 = arith.constant 0 : index
    %c0_0 = arith.constant 0 : index
    %0 = vector.load %arg1[%c0, %c0_0] : memref<2x512xf32, #tpu.memory_space<vmem>>, vector<2x512xf32>
    %c0_1 = arith.constant 0 : index
    %c0_2 = arith.constant 0 : index
    %1 = vector.load %arg2[%c0_1, %c0_2] : memref<64x2xf32, #tpu.memory_space<vmem>>, vector<64x2xf32>
    %2 = vector.extract_strided_slice %1 {offsets = [0, 0], sizes = [64, 1], strides = [1, 1]} : vector<64x2xf32> to vector<64x1xf32>
    %3 = vector.extract_strided_slice %0 {offsets = [0, 0], sizes = [1, 512], strides = [1, 1]} : vector<2x512xf32> to vector<1x512xf32>
    %4 = vector.broadcast %2 : vector<64x1xf32> to vector<64x512xf32>
    %5 = vector.broadcast %3 : vector<1x512xf32> to vector<64x512xf32>
    %6 = arith.mulf %4, %5 : vector<64x512xf32>
    %7 = vector.extract_strided_slice %1 {offsets = [0, 1], sizes = [64, 1], strides = [1, 1]} : vector<64x2xf32> to vector<64x1xf32>
    %8 = vector.extract_strided_slice %0 {offsets = [1, 0], sizes = [1, 512], strides = [1, 1]} : vector<2x512xf32> to vector<1x512xf32>
    %9 = vector.broadcast %7 : vector<64x1xf32> to vector<64x512xf32>
    %10 = vector.broadcast %8 : vector<1x512xf32> to vector<64x512xf32>
    %11 = arith.mulf %9, %10 : vector<64x512xf32>
    %12 = arith.addf %6, %11 : vector<64x512xf32>
    %c0_3 = arith.constant 0 : index
    %c0_4 = arith.constant 0 : index
    %13 = vector.load %arg3[%c0_3, %c0_4] : memref<64x1xf32, #tpu.memory_space<vmem>>, vector<64x1xf32>
    %14 = vector.broadcast %13 : vector<64x1xf32> to vector<64x512xf32>
    %15 = arith.addf %12, %14 : vector<64x512xf32>
    %cst = arith.constant 0.000000e+00 : f32
    %16 = vector.broadcast %cst : f32 to vector<64x512xf32>
    %17 = arith.maximumf %15, %16 : vector<64x512xf32>
    %c0_5 = arith.constant 0 : index
    %c0_6 = arith.constant 0 : index
    %18 = vector.load %arg4[%c0_5, %c0_6] : memref<8x64xf32, #tpu.memory_space<vmem>>, vector<8x64xf32>
    %cst_7 = arith.constant dense<0.000000e+00> : vector<8x512xf32>
    %19 = tpu.matmul %18, %17, %cst_7 {dimension_numbers = #tpu.dot_dimension_numbers<[1], [0], [0], [1], [0, 0, 1, 1], [], []>} : vector<8x64xf32>, vector<64x512xf32>, vector<8x512xf32> -> vector<8x512xf32>
    %c0_8 = arith.constant 0 : index
    %c0_9 = arith.constant 0 : index
    %20 = vector.load %arg5[%c0_8, %c0_9] : memref<8x1xf32, #tpu.memory_space<vmem>>, vector<8x1xf32>
    %21 = vector.broadcast %20 : vector<8x1xf32> to vector<8x512xf32>
    %22 = arith.addf %19, %21 : vector<8x512xf32>
    %cst_10 = arith.constant 0.000000e+00 : f32
    %23 = vector.broadcast %cst_10 : f32 to vector<8x512xf32>
    %24 = arith.maximumf %22, %23 : vector<8x512xf32>
    %c0_11 = arith.constant 0 : index
    %c0_12 = arith.constant 0 : index
    %25 = vector.load %arg6[%c0_11, %c0_12] : memref<8x1xf32, #tpu.memory_space<vmem>>, vector<8x1xf32>
    %26 = vector.broadcast %25 : vector<8x1xf32> to vector<8x512xf32>
    %27 = arith.mulf %26, %24 : vector<8x512xf32>
    %cst_13 = arith.constant dense<0.000000e+00> : vector<512xf32>
    %28 = vector.multi_reduction <add>, %27, %cst_13 [0] : vector<8x512xf32> to vector<512xf32>
    %29 = vector.shape_cast %28 : vector<512xf32> to vector<1x512xf32>
    %c0_14 = arith.constant 0 : index
    %c0_15 = arith.constant 0 : index
    %30 = vector.load %arg7[%c0_14, %c0_15] : memref<1x1xf32, #tpu.memory_space<vmem>>, vector<1x1xf32>
    %31 = vector.broadcast %30 : vector<1x1xf32> to vector<1x512xf32>
    %32 = arith.addf %29, %31 : vector<1x512xf32>
    %c0_16 = arith.constant 0 : index
    %c0_17 = arith.constant 0 : index
    %33 = vector.load %arg8[%c0_16, %c0_17] : memref<1x512xf32, #tpu.memory_space<vmem>>, vector<1x512xf32>
    tpu.vector_store %arg8[%c0_16, %c0_17], %32 {strides = array<i32>} : memref<1x512xf32, #tpu.memory_space<vmem>>, vector<1x512xf32>,
    return
  }
  func.func @transform_0(%arg0: i32) -> (i32, i32) {
    %c0_i32 = arith.constant 0 : i32
    %c0_i32_0 = arith.constant 0 : i32
    return %c0_i32, %arg0 : i32, i32
  }
  func.func @transform_1(%arg0: i32) -> (i32, i32) {
    %c0_i32 = arith.constant 0 : i32
    %c0_i32_0 = arith.constant 0 : i32
    %c0_i32_1 = arith.constant 0 : i32
    return %c0_i32, %c0_i32_0 : i32, i32
  }
  func.func @transform_2(%arg0: i32) -> (i32, i32) {
    %c0_i32 = arith.constant 0 : i32
    %c0_i32_0 = arith.constant 0 : i32
    %c0_i32_1 = arith.constant 0 : i32
    return %c0_i32, %c0_i32_0 : i32, i32
  }
  func.func @transform_3(%arg0: i32) -> (i32, i32) {
    %c0_i32 = arith.constant 0 : i32
    %c0_i32_0 = arith.constant 0 : i32
    %c0_i32_1 = arith.constant 0 : i32
    return %c0_i32, %c0_i32_0 : i32, i32
  }
  func.func @transform_4(%arg0: i32) -> (i32, i32) {
    %c0_i32 = arith.constant 0 : i32
    %c0_i32_0 = arith.constant 0 : i32
    %c0_i32_1 = arith.constant 0 : i32
    return %c0_i32, %c0_i32_0 : i32, i32
  }
  func.func @transform_5(%arg0: i32) -> (i32, i32) {
    %c0_i32 = arith.constant 0 : i32
    %c0_i32_0 = arith.constant 0 : i32
    %c0_i32_1 = arith.constant 0 : i32
    return %c0_i32, %c0_i32_0 : i32, i32
  }
  func.func @transform_6(%arg0: i32) -> (i32, i32) {
    %c0_i32 = arith.constant 0 : i32
    %c0_i32_0 = arith.constant 0 : i32
    %c0_i32_1 = arith.constant 0 : i32
    return %c0_i32, %c0_i32_0 : i32, i32
  }
  func.func @transform_7(%arg0: i32) -> (i32, i32) {
    %c0_i32 = arith.constant 0 : i32
    %c0_i32_0 = arith.constant 0 : i32
    return %c0_i32, %arg0 : i32, i32
  }
}

</mosaic_0001>

<bundles_post_ra>
// kernel: tpu_custom_call.1
= control target key start
LH: loop header
LB: loop body
LE: loop exit
PB: predicated region body
PF: predicated region fallthrough
CT: control target
= control target key end

     0   :  { %s1462_s0 = inlined_call_operand.vmem [shape: f32[2,1024], index: 0, kind: input, shape index: {}]   ;;  %s1463_s1 = inlined_call_operand.vmem [shape: f32[64,2], index: 1, kind: input, shape index: {}]   ;;  %s1464_s2 = inlined_call_operand.vmem [shape: f32[64,1], index: 2, kind: input, shape index: {}]   ;;  %s1465_s3 = inlined_call_operand.vmem [shape: f32[8,64], index: 3, kind: input, shape index: {}]   ;;  %s1466_s4 = inlined_call_operand.vmem [shape: f32[8,1], index: 4, kind: input, shape index: {}]   ;;  %s1467_s5 = inlined_call_operand.vmem [shape: f32[8,1], index: 5, kind: input, shape index: {}]   ;;  %s1468_s6 = inlined_call_operand.<no memory space> [shape: f32[1,1], index: 6, kind: input, shape index: {}]   ;;  %s1469_s7 = inlined_call_operand.hbm [shape: f32[1,1024], index: 7, kind: output, shape index: {}]  }
   0x1   :  { %v12_v0 = vstv %s1468_s6 }
   0x2   :  { %13 = vst [vmem:[#allocation2] sm:$0x1] %v12_v0 }
   0x3   :  { %14 = vsyncpa [#allocation4], 0 }
   0x4   :  { %16 = vsyncpa [#allocation4 + $0x1], 0  ;;  %s1169_s26 = smov 0   ;;  %s1171_s27 = smov 0  }
   0x5   :  { %s1173_s28 = smov 0   ;;  %s1175_s29 = smov 0  }
   0x6 LB: > { %s1190_s6 = sadd.s32 4294967295, %s1119_s29   ;;  %s957_s30 = sadd.s32 4294967294, %s1119_s29   ;;  %s1119_s29 = sphi %s1175_s29, %s1475_s29   ;;  %s1115_s28 = sphi %s1173_s28, %s1474_s28   ;;  %s1111_s27 = sphi %s1171_s27, %s1473_s27   ;;  %s1107_s26 = sphi %s1169_s26, %s1472_s26  }
   0x7   : > { %s1194_s8 = sadd.s32 1, %s1119_s29   ;;  %s181_s9 = sadd.s32 1, %s1115_s28 }
   0x8   : > { %s178_s10 = ssub.s32 %s1119_s29, %s1194_s8  ;;  %p191_p0 = scmp.ne.s32.totalorder %s1115_s28, %s1111_s27 }
   0x9   : > { %p179_p1 = scmp.eq.s32.totalorder %s178_s10, 0  ;;  %p192_p2 = scmp.eq.s32.totalorder %s1190_s6, 1 }
   0xa   : > { %p197_p3 = scmp.ne.s32.totalorder %s1111_s27, %s1107_s26  ;;  %p198_p4 = scmp.eq.s32.totalorder %s957_s30, 1 }
   0xb   : > { %s1205_s11 = scalar_select %p179_p1, %s1115_s28, %s181_s9  }
   0xc   : > { %p1207_p5 = por %p192_p2, %p191_p0  ;;  %p1211_p6 = por %p198_p4, %p197_p3 }
   0xd   : > { %p960_p7 = scmp.ge.s32.totalorder %s1119_s29, 1  ;;  %p243_p8 = scmp.lt.s32.totalorder %s1119_s29, 3 }
   0xf   : > { %p244_p9 = pnand %p960_p7, %p243_p8 }
  0x10   : > { %v285_v1 = vld [vmem:[%s1463_s1 + $0x10] sm:$0xff] (!%p244_p9)  ;;  %v283_v2 = vld [vmem:[%s1463_s1] sm:$0xff] (!%p244_p9)  ;;  %v1121_v3 = vmov (!%p244_p9), 1   ;;  %v284_v5 = vld [vmem:[%s1463_s1 + $0x8] sm:$0xff] (!%p244_p9)  ;;  %v1122_v8 = vmov (!%p244_p9), 0   ;;  %v1123_v22 = vmov (!%p244_p9), 0.0   ;;  %v332_v23 = vlaneseq (!%p244_p9) }
  0x11   : > { %247 = sbr.rel (%p244_p9) target bundleno = 474 (0x1da), region = 48  ;;  %1049 = vset.pattern.permute.xlu0 (!%p244_p9), %v1121_v3  ;;  %1047 = vset.pattern.permute.xlu1 (!%p244_p9), %v1121_v3  ;;  %v287_v4 = vld [vmem:[%s1463_s1 + $0x20] sm:$0xff] (!%p244_p9)  ;;  %v289_v6 = vld [vmem:[%s1463_s1 + $0x30] sm:$0xff] (!%p244_p9)  ;;  %v286_v7 = vld [vmem:[%s1463_s1 + $0x18] sm:$0xff] (!%p244_p9)  ;;  %s962_s20 = sshll.u32 (!%p244_p9), %s1190_s6, 2  ;;  %vm651_vm0 = vcmask (!%p244_p9), 523264  }
  0x12   : > { %409 = vperm.xlu0 (!%p244_p9), %1049, %v285_v1   ;;  %401 = vperm.xlu1 (!%p244_p9), %1047, %v283_v2   ;;  %v532_v9 = vld [vmem:[%s1464_s2] sm:$0xff] (!%p244_p9)  ;;  %v533_v10 = vld [vmem:[%s1464_s2 + $0x8] sm:$0xff] (!%p244_p9)  ;;  %v535_v12 = vld [vmem:[%s1464_s2 + $0x18] sm:$0xff] (!%p244_p9)  ;;  %p276_p10 = scmp.lt.s32.totalorder (!%p244_p9), %s962_s20, 7  ;;  %v1275_v26 = vshrl.u32 (!%p244_p9), %v332_v23, 7  ;;  %s272_s9 = sand.u32 (!%p244_p9), 1, %s1111_s27  }
  0x13   : > { %v288_v11 = vld [vmem:[%s1463_s1 + $0x28] sm:$0xff] (!%p244_p9)  ;;  %v645_v14 = vld [vmem:[%s1466_s4] sm:$0xff] (!%p244_p9)  ;;  %v534_v15 = vld [vmem:[%s1464_s2 + $0x10] sm:$0xff] (!%p244_p9)  ;;  %719 = vmatprep.mubr.f32.mxu0 (!%p244_p9), %v1123_v22  ;;  %790 = vmatprep.mubr.f32.mxu1 (!%p244_p9), %v1123_v22  ;;  %s961_s10 = sshll.u32 (!%p244_p9), %s272_s9, 2  ;;  %s971_s14 = sshll.u32 (!%p244_p9), %s1190_s6, 6  ;;  %vm880_vm1 = vcmp.lt.s32.totalorder (!%p244_p9), %v332_v23, 512 }
  0x14   : > { %v537_v13 = vld [vmem:[%s1464_s2 + $0x28] sm:$0xff] (!%p244_p9)  ;;  %v835_v16 = vld [vmem:[#allocation2] sm:$0x1] (!%p244_p9)  ;;  %v290_v17 = vld [vmem:[%s1463_s1 + $0x38] sm:$0xff] (!%p244_p9)  ;;  %v438_v29 = vsub.s32 (!%p244_p9), 3, %v1275_v26  ;;  %v446_v30 = vsub.s32 (!%p244_p9), 7, %v1275_v26  ;;  %s1420_s19 = scalar_lea.hbm (!%p244_p9), %s1469_s7, %s971_s14 }
  0x15   : > { %v536_v18 = vld [vmem:[%s1464_s2 + $0x20] sm:$0xff] (!%p244_p9)  ;;  %v538_v19 = vld [vmem:[%s1464_s2 + $0x30] sm:$0xff] (!%p244_p9)  ;;  %v539_v20 = vld [vmem:[%s1464_s2 + $0x38] sm:$0xff] (!%p244_p9)  ;;  %v338_v31 = vsub.s32 (!%p244_p9), 2, %v1275_v26  ;;  %v346_v32 = vsub.s32 (!%p244_p9), 6, %v1275_v26  ;;  %v434_v33 = vsub.s32 (!%p244_p9), 1, %v1275_v26 }
  0x16   : > { %417 = vperm.xlu0 (!%p244_p9), %1049, %v287_v4   ;;  %405 = vperm.xlu1 (!%p244_p9), %1047, %v284_v5   ;;  %v801_v21 = vld [vmem:[%s1467_s5] sm:$0xff] (!%p244_p9)  ;;  %v442_v34 = vsub.s32 (!%p244_p9), 5, %v1275_v26  ;;  %v1291_v37 = vsub.s32 (!%p244_p9), 0, %v1275_v26  ;;  %v342_v38 = vsub.s32 (!%p244_p9), 4, %v1275_v26  ;;  %s274_s15 = scalar_lea.vmem (!%p244_p9), [#allocation3], %s961_s10  ;;  %s1125_s6 = smov (!%p244_p9), [#allocation3]  }
  0x17   : > { %s898_s16 = sshll.u32 (!%p244_p9), %s274_s15, 4  ;;  %s1061_s22 = sshll.u32 (!%p244_p9), %s1125_s6, 4  ;;  %s1422_s16 = int_to_ptr.vmem [resolvable:$true] %s898_s16  ;;  %s1062_s22 = int_to_ptr.vmem [resolvable:$false] %s1061_s22 }
  0x18   : > { %s1477_s20 = smov (!%p276_p10, %s962_s20), 7  ;;  %s1063_s23 = scalar_lea.vmem %s1062_s22, 128 }
  0x19   : > { %s963_s21 = sshll.u32 %s1477_s20, 1  ;;  %s884_s20 = scalar_lea.sflag [#allocation4], %s272_s9 }
  0x1a   : > { %425 = vperm.xlu0 %1049, %v289_v6   ;;  %1048 = vset.pattern.permute.xlu1 %v1122_v8  ;;  %s279_s24 = scalar_lea.vmem %s1462_s0, %s963_s21  ;;  %s1057_s21 = scalar_lea.vmem %s1422_s16, 64 }
  0x1b   : > { %308 = vperm.xlu1 %1048, %v286_v7   ;;  %v282_v35 = vld [vmem:[%s279_s24] sm:$0xff]  ;;  %p1058_p11 = scmp.ne.s32.totalorder %s1422_s16, %s1057_s21  ;;  %p1064_p0 = scmp.lt.s32.totalorder %s1422_s16, %s1062_s22 }
  0x1c   : > { %v439_v40 = vrot.slane %v282_v35, %v438_v29  ;;  %v447_v41 = vrot.slane %v282_v35, %v446_v30  ;;  %v339_v42 = vrot.slane %v282_v35, %v338_v31  ;;  %v347_v43 = vrot.slane %v282_v35, %v346_v32  ;;  %p1065_p1 = scmp.lt.s32.totalorder %s1063_s23, %s1057_s21 }
  0x1d   : > { %v435_v44 = vrot.slane %v282_v35, %v434_v33  ;;  %v443_v45 = vrot.slane %v282_v35, %v442_v34  ;;  %v335_v46 = vrot.slane %v282_v35, %v1291_v37  ;;  %v343_v47 = vrot.slane %v282_v35, %v342_v38  ;;  %p1059_p12 = pnand %p1058_p11, %p1207_p5 }
  0x1e   : > { %1054 = vset.pattern.permute.xlu0 %v1122_v8  ;;  %v1297_v50 = vrot.slane %v439_v40, %v434_v33  ;;  %v1299_v51 = vrot.slane %v447_v41, %v434_v33  ;;  %v1302_v52 = vrot.slane %v339_v42, %v1291_v37  ;;  %v1305_v53 = vrot.slane %v347_v43, %v1291_v37  ;;  %p1066_p2 = por %p1065_p1, %p1064_p0 }
  0x1f   : > { %293 = vperm.xlu0 %1054, %v283_v2   ;;  %1050 = vset.pattern.permute.xlu1 %v1121_v3  ;;  %v1307_v54 = vrot.slane %v435_v44, %v434_v33  ;;  %v1309_v55 = vrot.slane %v443_v45, %v434_v33  ;;  %v1312_v56 = vrot.slane %v335_v46, %v1291_v37  ;;  %p1060_p13 = pneg %p1059_p12 }
  0x20   : > { %413 = vperm.xlu1 %1050, %v286_v7   ;;  %v1315_v57 = vrot.slane %v343_v47, %v1291_v37 }
  0x21   : > { %p1067_p3 = pnand %p1066_p2, %p1060_p13 }
  0x23   : > { %298 = vperm.xlu0 %1054, %v284_v5  }
  0x24   : > { %1051 = vset.pattern.permute.xlu1 %v1122_v8 }
  0x25   : > { %542 = vperm.xlu1 %1051, %v532_v9  }
  0x27   : > { %303 = vperm.xlu0 %1054, %v285_v1  }
  0x29   : > { %313 = vperm.xlu1 %1051, %v287_v4  }
  0x2b   : > { %547 = vperm.xlu0 %1054, %v533_v10  }
  0x2d   : > { %318 = vperm.xlu1 %1051, %v288_v11  }
  0x2f   : > { %557 = vperm.xlu0 %1054, %v535_v12  }
  0x31   : > { %1052 = vset.pattern.permute.xlu1 %v1121_v3 }
  0x32   : > { %421 = vperm.xlu1 %1052, %v288_v11  }
  0x33   : > { %567 = vperm.xlu0 %1054, %v537_v13  }
  0x36   : > { %1053 = vset.pattern.permute.xlu1 %v1122_v8 }
  0x37   : > { %648 = vperm.xlu0 %1054, %v645_v14   ;;  %552 = vperm.xlu1 %1053, %v534_v15  }
  0x3b   : > { %838 = vperm.xlu0 %1054, %v835_v16   ;;  %323 = vperm.xlu1 %1053, %v289_v6  }
  0x3f   : > { %328 = vperm.xlu1 %1053, %v290_v17  }
  0x43   : > { %1055 = vset.pattern.permute.xlu1 %v1121_v3 }
  0x44   : > { %429 = vperm.xlu1 %1055, %v290_v17  }
  0x48   : > { %1056 = vset.pattern.permute.xlu1 %v1122_v8 }
  0x49   : > { %562 = vperm.xlu1 %1056, %v536_v18  }
  0x4d   : > { %572 = vperm.xlu1 %1056, %v538_v19  }
  0x51   : > { %577 = vperm.xlu1 %1056, %v539_v20  }
  0x55   : > { %804 = vperm.xlu1 %1056, %v801_v21  }
  0x91   : > { %v402_v24 = vpop.permute.xlu1 %401  ;;  %v1272_v25 = vpop.permute.xlu0 %409 }
  0x92   : > { %v469_v63 = vmul.f32 %v1297_v50, %v402_v24  ;;  %v471_v0 = vmul.f32 %v1299_v51, %v402_v24  ;;  %v468_v4 = vmul.f32 %v1307_v54, %v402_v24  ;;  %v470_v5 = vmul.f32 %v1309_v55, %v402_v24 }
  0x93   : > { %v477_v38 = vmul.f32 %v1297_v50, %v1272_v25  ;;  %v478_v40 = vmul.f32 %v1309_v55, %v1272_v25  ;;  %v479_v41 = vmul.f32 %v1299_v51, %v1272_v25 }
  0x95   : > { %v406_v27 = vpop.permute.xlu1 %405  ;;  %v1277_v28 = vpop.permute.xlu0 %417 }
  0x96   : > { %v473_v8 = vmul.f32 %v1297_v50, %v406_v27  ;;  %v475_v9 = vmul.f32 %v1299_v51, %v406_v27  ;;  %v472_v13 = vmul.f32 %v1307_v54, %v406_v27  ;;  %v474_v14 = vmul.f32 %v1309_v55, %v406_v27 }
  0x97   : > { %v476_v27 = vmul.f32 %v1307_v54, %v1272_v25 }
  0x99   : > { %v1288_v36 = vpop.permute.xlu0 %425 }
  0x9a   : > { %v1294_v39 = vpop.permute.xlu1 %308 }
  0x9e   : > { %v294_v48 = vpop.permute.xlu0 %293 }
  0x9f   : > { %v414_v49 = vpop.permute.xlu1 %413  ;;  %v369_v58 = vmul.f32 %v1302_v52, %v294_v48  ;;  %v371_v59 = vmul.f32 %v1305_v53, %v294_v48  ;;  %v368_v61 = vmul.f32 %v1312_v56, %v294_v48  ;;  %v370_v62 = vmul.f32 %v1315_v57, %v294_v48 }
  0xa1   : > { %v501_v11 = vadd.f32 %v469_v63, %v369_v58  ;;  %v503_v12 = vadd.f32 %v471_v0, %v371_v59  ;;  %v500_v15 = vadd.f32 %v468_v4, %v368_v61  ;;  %v502_v16 = vadd.f32 %v470_v5, %v370_v62 }
  0xa2   : > { %v299_v60 = vpop.permute.xlu0 %298  ;;  %v481_v61 = vmul.f32 %v1297_v50, %v414_v49  ;;  %v482_v62 = vmul.f32 %v1309_v55, %v414_v49  ;;  %v483_v63 = vmul.f32 %v1299_v51, %v414_v49 }
  0xa3   : > { %v373_v1 = vmul.f32 %v1302_v52, %v299_v60  ;;  %v375_v2 = vmul.f32 %v1305_v53, %v299_v60  ;;  %v372_v6 = vmul.f32 %v1312_v56, %v299_v60  ;;  %v374_v7 = vmul.f32 %v1315_v57, %v299_v60 }
  0xa4   : > { %v543_v3 = vpop.permute.xlu1 %542  ;;  %v480_v60 = vmul.f32 %v1307_v54, %v414_v49  ;;  %v382_v49 = vmul.f32 %v1315_v57, %v1294_v39 }
  0xa5   : > { %v505_v18 = vadd.f32 %v473_v8, %v373_v1  ;;  %v581_v19 = vadd.f32 %v543_v3, %v501_v11  ;;  %v507_v20 = vadd.f32 %v475_v9, %v375_v2  ;;  %v583_v21 = vadd.f32 %v543_v3, %v503_v12 }
  0xa6   : > { %v304_v10 = vpop.permute.xlu0 %303  ;;  %v504_v22 = vadd.f32 %v472_v13, %v372_v6  ;;  %v580_v24 = vadd.f32 %v543_v3, %v500_v15  ;;  %v506_v29 = vadd.f32 %v474_v14, %v374_v7  ;;  %v582_v30 = vadd.f32 %v543_v3, %v502_v16 }
  0xa7   : > { %v613_v43 = vmax.f32 %v581_v19, 0.0  ;;  %v615_v44 = vmax.f32 %v583_v21, 0.0  ;;  %v376_v3 = vmul.f32 %v1312_v56, %v304_v10  ;;  %v377_v4 = vmul.f32 %v1302_v52, %v304_v10 }
  0xa8   : > { %v1333_v17 = vpop.permute.xlu1 %313  ;;  %v612_v45 = vmax.f32 %v580_v24, 0.0  ;;  %v614_v46 = vmax.f32 %v582_v30, 0.0  ;;  %v378_v5 = vmul.f32 %v1315_v57, %v304_v10  ;;  %v379_v6 = vmul.f32 %v1305_v53, %v304_v10 }
  0xa9   : > { %v380_v8 = vmul.f32 %v1312_v56, %v1294_v39  ;;  %v381_v9 = vmul.f32 %v1302_v52, %v1294_v39  ;;  %v383_v11 = vmul.f32 %v1305_v53, %v1294_v39  ;;  %v514_v10 = vadd.f32 %v482_v62, %v382_v49 }
  0xaa   : > { %v548_v31 = vpop.permute.xlu0 %547  ;;  %v508_v16 = vadd.f32 %v476_v27, %v376_v3  ;;  %v510_v19 = vadd.f32 %v478_v40, %v378_v5  ;;  %v384_v49 = vmul.f32 %v1312_v56, %v1333_v17 }
  0xab   : > { %v585_v32 = vadd.f32 %v548_v31, %v505_v18  ;;  %v587_v33 = vadd.f32 %v548_v31, %v507_v20  ;;  %v584_v34 = vadd.f32 %v548_v31, %v504_v22  ;;  %v586_v35 = vadd.f32 %v548_v31, %v506_v29 }
  0xac   : > { %v1343_v42 = vpop.permute.xlu1 %318  ;;  %v512_v13 = vadd.f32 %v480_v60, %v380_v8  ;;  %v513_v14 = vadd.f32 %v481_v61, %v381_v9  ;;  %v515_v15 = vadd.f32 %v483_v63, %v383_v11  ;;  %v509_v18 = vadd.f32 %v477_v38, %v377_v4 }
  0xad   : > { %v617_v47 = vmax.f32 %v585_v32, 0.0  ;;  %v619_v48 = vmax.f32 %v587_v33, 0.0  ;;  %v616_v58 = vmax.f32 %v584_v34, 0.0  ;;  %v618_v59 = vmax.f32 %v586_v35, 0.0 }
  0xae   : > { %v558_v12 = vpop.permute.xlu0 %557  ;;  %v511_v20 = vadd.f32 %v479_v41, %v379_v6  ;;  %v389_v63 = vmul.f32 %v1302_v52, %v1343_v42  ;;  %v485_v8 = vmul.f32 %v1297_v50, %v1277_v28  ;;  %v486_v9 = vmul.f32 %v1309_v55, %v1277_v28 }
  0xaf   : > { %v972_v0 = vpack.c.bf16 %v617_v47, %v613_v43  ;;  %v988_v25 = vpack.c.bf16 %v619_v48, %v615_v44  ;;  %v974_v1 = vpack.c.bf16 %v616_v58, %v612_v45  ;;  %v990_v2 = vpack.c.bf16 %v618_v59, %v614_v46 }
  0xb0   : > { %v592_v21 = vadd.f32 %v558_v12, %v512_v13  ;;  %v593_v22 = vadd.f32 %v558_v12, %v513_v14  ;;  %v594_v24 = vadd.f32 %v558_v12, %v514_v10  ;;  %v595_v29 = vadd.f32 %v558_v12, %v515_v15 }
  0xb1   : > { %v422_v7 = vpop.permute.xlu1 %421  ;;  %973 = vmatprep.subr.bf16.mxu0 %v972_v0  ;;  %989 = vmatprep.subr.bf16.mxu1 %v988_v25  ;;  %v388_v59 = vmul.f32 %v1312_v56, %v1343_v42  ;;  %v390_v0 = vmul.f32 %v1315_v57, %v1343_v42  ;;  %v391_v25 = vmul.f32 %v1305_v53, %v1343_v42 }
  0xb2   : > { %975 = vmatpush1.bf16.msra.mxu0 %v974_v1  ;;  %991 = vmatpush1.bf16.msra.mxu1 %v990_v2  ;;  %v625_v46 = vmax.f32 %v593_v22, 0.0  ;;  %v627_v47 = vmax.f32 %v595_v29, 0.0  ;;  %v624_v27 = vmax.f32 %v592_v21, 0.0  ;;  %v626_v38 = vmax.f32 %v594_v24, 0.0  ;;  %v568_v14 = vpop.permute.xlu0 %567 }
  0xb3   : > { %v488_v40 = vmul.f32 %v1307_v54, %v422_v7  ;;  %v489_v41 = vmul.f32 %v1297_v50, %v422_v7  ;;  %v490_v48 = vmul.f32 %v1309_v55, %v422_v7  ;;  %v491_v58 = vmul.f32 %v1299_v51, %v422_v7 }
  0xb4   : > { %v484_v7 = vmul.f32 %v1307_v54, %v1277_v28  ;;  %v487_v42 = vmul.f32 %v1299_v51, %v1277_v28  ;;  %v385_v11 = vmul.f32 %v1302_v52, %v1333_v17  ;;  %v386_v12 = vmul.f32 %v1315_v57, %v1333_v17 }
  0xb5   : > { %v520_v3 = vadd.f32 %v488_v40, %v388_v59  ;;  %v521_v4 = vadd.f32 %v489_v41, %v389_v63  ;;  %v522_v5 = vadd.f32 %v490_v48, %v390_v0  ;;  %v523_v6 = vadd.f32 %v491_v58, %v391_v25 }
  0xb6   : > { %v553_v30 = vpop.permute.xlu1 %552  ;;  %v387_v13 = vmul.f32 %v1305_v53, %v1333_v17  ;;  %v492_v24 = vmul.f32 %v1307_v54, %v1288_v36  ;;  %v493_v17 = vmul.f32 %v1297_v50, %v1288_v36  ;;  %v494_v29 = vmul.f32 %v1309_v55, %v1288_v36 }
  0xb7   : > { %v588_v31 = vadd.f32 %v553_v30, %v508_v16  ;;  %v589_v39 = vadd.f32 %v553_v30, %v509_v18  ;;  %v590_v32 = vadd.f32 %v553_v30, %v510_v19  ;;  %v591_v33 = vadd.f32 %v553_v30, %v511_v20 }
  0xb8   : > { %v600_v10 = vadd.f32 %v568_v14, %v520_v3  ;;  %v601_v15 = vadd.f32 %v568_v14, %v521_v4  ;;  %v602_v16 = vadd.f32 %v568_v14, %v522_v5  ;;  %v603_v18 = vadd.f32 %v568_v14, %v523_v6 }
  0xb9   : > { %v621_v34 = vmax.f32 %v589_v39, 0.0  ;;  %v623_v35 = vmax.f32 %v591_v33, 0.0  ;;  %v620_v43 = vmax.f32 %v588_v31, 0.0  ;;  %v622_v44 = vmax.f32 %v590_v32, 0.0 }
  0xba   : > { %v324_v45 = vpop.permute.xlu1 %323  ;;  %v495_v30 = vmul.f32 %v1299_v51, %v1288_v36  ;;  %v516_v31 = vadd.f32 %v484_v7, %v384_v49  ;;  %v517_v39 = vadd.f32 %v485_v8, %v385_v11  ;;  %v518_v32 = vadd.f32 %v486_v9, %v386_v12 }
  0xbb   : > { %v976_v60 = vpack.c.bf16 %v625_v46, %v621_v34  ;;  %v992_v61 = vpack.c.bf16 %v627_v47, %v623_v35  ;;  %v978_v62 = vpack.c.bf16 %v624_v27, %v620_v43  ;;  %v994_v1 = vpack.c.bf16 %v626_v38, %v622_v44 }
  0xbc   : > { %v392_v28 = vmul.f32 %v1312_v56, %v324_v45  ;;  %v393_v20 = vmul.f32 %v1302_v52, %v324_v45  ;;  %v394_v21 = vmul.f32 %v1315_v57, %v324_v45  ;;  %v395_v22 = vmul.f32 %v1305_v53, %v324_v45 }
  0xbd   : > { %977 = vmatprep.subr.bf16.mxu0 %v976_v60  ;;  %993 = vmatprep.subr.bf16.mxu1 %v992_v61  ;;  %v519_v33 = vadd.f32 %v487_v42, %v387_v13  ;;  %v633_v34 = vmax.f32 %v601_v15, 0.0  ;;  %v635_v35 = vmax.f32 %v603_v18, 0.0  ;;  %v632_v43 = vmax.f32 %v600_v10, 0.0 }
  0xbe   : > { %v329_v2 = vpop.permute.xlu1 %328  ;;  %979 = vmatpush1.bf16.msra.mxu0 %v978_v62  ;;  %995 = vmatpush1.bf16.msra.mxu1 %v994_v1  ;;  %v634_v44 = vmax.f32 %v602_v16, 0.0  ;;  %v524_v46 = vadd.f32 %v492_v24, %v392_v28  ;;  %v525_v47 = vadd.f32 %v493_v17, %v393_v20  ;;  %v526_v27 = vadd.f32 %v494_v29, %v394_v21  ;;  %v644_v29 = vld [vmem:[%s1465_s3] sm:$0xff] }
  0xbf   : > { %v527_v38 = vadd.f32 %v495_v30, %v395_v22  ;;  %v396_v1 = vmul.f32 %v1312_v56, %v329_v2  ;;  %v397_v3 = vmul.f32 %v1302_v52, %v329_v2  ;;  %v398_v4 = vmul.f32 %v1315_v57, %v329_v2  ;;  %v649_v30 = vpop.permute.xlu0 %648 }
  0xc0   : > { %v399_v5 = vmul.f32 %v1305_v53, %v329_v2 }
  0xc3   : > { %v430_v19 = vpop.permute.xlu1 %429 }
  0xc4   : > { %v496_v59 = vmul.f32 %v1307_v54, %v430_v19  ;;  %v497_v36 = vmul.f32 %v1297_v50, %v430_v19  ;;  %v498_v60 = vmul.f32 %v1309_v55, %v430_v19  ;;  %v499_v61 = vmul.f32 %v1299_v51, %v430_v19 }
  0xc6   : > { %v528_v49 = vadd.f32 %v496_v59, %v396_v1  ;;  %v529_v11 = vadd.f32 %v497_v36, %v397_v3  ;;  %v530_v12 = vadd.f32 %v498_v60, %v398_v4  ;;  %v531_v13 = vadd.f32 %v499_v61, %v399_v5 }
  0xc8   : > { %v563_v45 = vpop.permute.xlu1 %562 }
  0xc9   : > { %v596_v40 = vadd.f32 %v563_v45, %v516_v31  ;;  %v597_v41 = vadd.f32 %v563_v45, %v517_v39  ;;  %v598_v48 = vadd.f32 %v563_v45, %v518_v32  ;;  %v599_v58 = vadd.f32 %v563_v45, %v519_v33 }
  0xcb   : > { %v629_v62 = vmax.f32 %v597_v41, 0.0  ;;  %v631_v63 = vmax.f32 %v599_v58, 0.0  ;;  %v628_v0 = vmax.f32 %v596_v40, 0.0  ;;  %v630_v25 = vmax.f32 %v598_v48, 0.0 }
  0xcc   : > { %v573_v6 = vpop.permute.xlu1 %572 }
  0xcd   : > { %v604_v54 = vadd.f32 %v573_v6, %v524_v46  ;;  %v605_v7 = vadd.f32 %v573_v6, %v525_v47  ;;  %v606_v50 = vadd.f32 %v573_v6, %v526_v27  ;;  %v607_v8 = vadd.f32 %v573_v6, %v527_v38 }
  0xce   : > { %v980_v55 = vpack.c.bf16 %v633_v34, %v629_v62  ;;  %v996_v9 = vpack.c.bf16 %v635_v35, %v631_v63  ;;  %v982_v51 = vpack.c.bf16 %v632_v43, %v628_v0  ;;  %v998_v42 = vpack.c.bf16 %v634_v44, %v630_v25 }
  0xcf   : > { %v637_v2 = vmax.f32 %v605_v7, 0.0  ;;  %v639_v10 = vmax.f32 %v607_v8, 0.0  ;;  %v636_v15 = vmax.f32 %v604_v54, 0.0  ;;  %v638_v16 = vmax.f32 %v606_v50, 0.0  ;;  %v839_v8 = vpop.permute.xlu0 %838 }
  0xd0   : > { %981 = vmatprep.subr.bf16.mxu0 %v980_v55  ;;  %997 = vmatprep.subr.bf16.mxu1 %v996_v9  ;;  %v578_v52 = vpop.permute.xlu1 %577  ;;  %v1124_v6 = vmov 1966171168  }
  0xd1   : > { %v608_v56 = vadd.f32 %v578_v52, %v528_v49  ;;  %v609_v57 = vadd.f32 %v578_v52, %v529_v11  ;;  %v610_v14 = vadd.f32 %v578_v52, %v530_v12  ;;  %v611_v53 = vadd.f32 %v578_v52, %v531_v13  ;;  %983 = vmatpush1.bf16.msra.mxu0 %v982_v51 }
  0xd2   : > { %999 = vmatpush1.bf16.msra.mxu1 %v998_v42  ;;  %v856_v54 = vunpack.c.l.s4 %v1124_v6  ;;  %v844_v13 = vrot.slane %v839_v8, %v1291_v37 }
  0xd3   : > { %v641_v18 = vmax.f32 %v609_v57, 0.0  ;;  %v643_v19 = vmax.f32 %v611_v53, 0.0  ;;  %v640_v28 = vmax.f32 %v608_v56, 0.0  ;;  %v642_v20 = vmax.f32 %v610_v14, 0.0 }
  0xd4   : > { %v805_v47 = vpop.permute.xlu1 %804  ;;  %v857_v12 = vunpack.c.0.s8 %v856_v54 }
  0xd5   : > { %v984_v21 = vpack.c.bf16 %v641_v18, %v637_v2  ;;  %v1000_v22 = vpack.c.bf16 %v643_v19, %v639_v10  ;;  %v986_v24 = vpack.c.bf16 %v640_v28, %v636_v15  ;;  %v1002_v17 = vpack.c.bf16 %v642_v20, %v638_v16 }
  0xd6   : > { %v860_v16 = vsub.s32 %v857_v12, %v1275_v26 }
  0xd7   : > { %985 = vmatprep.subr.bf16.mxu0 %v984_v21  ;;  %1001 = vmatprep.subr.bf16.mxu1 %v1000_v22 }
  0xd8   : > { %987 = vmatpush1.bf16.msra.mxu0 %v986_v24  ;;  %1003 = vmatpush1.bf16.msra.mxu1 %v1002_v17 }
  0xdb   : > { %964 = vmatmul.mubr.msk.f32.vlgmr.msra.gmra.mrb[0].mxu0 %vm651_vm0, %v644_v29  ;;  %965 = vmatmul.mubr.msk.f32.vlgmr.msra.gmra.mrb[0].mxu1 %vm651_vm0, %v644_v29 }
 0x1ae   : > { %v721_v31 = vpop.f32.mrb[0].mxu0  ;;  %v792_v39 = vpop.f32.mrb[0].mxu1 }
 0x1af   : > { %v722_v32 = vadd.f32 %v721_v31, %v649_v30  ;;  %v793_v33 = vadd.f32 %v792_v39, %v649_v30  ;;  %v723_v34 = vpop.f32.mrb[1].mxu0  ;;  %v794_v35 = vpop.f32.mrb[1].mxu1 }
 0x1b0   : > { %v724_v43 = vadd.f32 %v723_v34, %v649_v30  ;;  %v795_v44 = vadd.f32 %v794_v35, %v649_v30 }
 0x1b1   : > { %v797_v45 = vmax.f32 %v722_v32, 0.0  ;;  %v799_v46 = vmax.f32 %v793_v33, 0.0 }
 0x1b2   : > { %v798_v27 = vmax.f32 %v724_v43, 0.0  ;;  %v800_v38 = vmax.f32 %v795_v44, 0.0 }
 0x1b3   : > { %v807_v40 = vmul.f32 %v805_v47, %v797_v45  ;;  %v809_v41 = vmul.f32 %v805_v47, %v799_v46 }
 0x1b4   : > { %v808_v48 = vmul.f32 %v805_v47, %v798_v27  ;;  %v810_v58 = vmul.f32 %v805_v47, %v800_v38 }
 0x1b5   : > { %v811_v59 = vrot.slane %v807_v40, 4  ;;  %v823_v36 = vrot.slane %v809_v41, 4 }
 0x1b6   : > { %v817_v60 = vrot.slane %v808_v48, 4  ;;  %v829_v61 = vrot.slane %v810_v58, 4 }
 0x1b7   : > { %v812_v62 = vadd.f32 %v811_v59, %v807_v40  ;;  %v824_v63 = vadd.f32 %v823_v36, %v809_v41 }
 0x1b8   : > { %v818_v0 = vadd.f32 %v817_v60, %v808_v48  ;;  %v830_v25 = vadd.f32 %v829_v61, %v810_v58 }
 0x1b9   : > { %v813_v1 = vrot.slane %v812_v62, 2  ;;  %v825_v3 = vrot.slane %v824_v63, 2 }
 0x1ba   : > { %v819_v4 = vrot.slane %v818_v0, 2  ;;  %v831_v5 = vrot.slane %v830_v25, 2 }
 0x1bb   : > { %v814_v7 = vadd.f32 %v813_v1, %v812_v62  ;;  %v826_v50 = vadd.f32 %v825_v3, %v824_v63 }
 0x1bc   : > { %v820_v55 = vadd.f32 %v819_v4, %v818_v0  ;;  %v832_v9 = vadd.f32 %v831_v5, %v830_v25 }
 0x1bd   : > { %v815_v51 = vrot.slane %v814_v7, 1  ;;  %v827_v42 = vrot.slane %v826_v50, 1 }
 0x1be   : > { %v821_v49 = vrot.slane %v820_v55, 1  ;;  %v833_v11 = vrot.slane %v832_v9, 1 }
 0x1bf   : > { %v816_v52 = vadd.f32 %v815_v51, %v814_v7  ;;  %v828_v56 = vadd.f32 %v827_v42, %v826_v50 }
 0x1c0   : > { %v822_v57 = vadd.f32 %v821_v49, %v820_v55  ;;  %v834_v14 = vadd.f32 %v833_v11, %v832_v9 }
 0x1c1   : > { %v845_v53 = vadd.f32 %v844_v13, %v816_v52  ;;  %v847_v2 = vadd.f32 %v844_v13, %v828_v56 }
 0x1c2   : > { %v846_v10 = vadd.f32 %v844_v13, %v822_v57  ;;  %v848_v15 = vadd.f32 %v844_v13, %v834_v14 }
 0x1c4   : > { %v853_v18 = vcombine.low %v845_v53, %v846_v10  ;;  %v854_v19 = vcombine.low %v847_v2, %v848_v15 }
 0x1c6   : > { %v861_v28 = vrot.slane %v853_v18, %v860_v16  ;;  %v868_v20 = vrot.slane %v854_v19, %v860_v16 }
 0x1c8   : > { %v869_v37 = vcombine.low %v861_v28, %v868_v20 }
 0x1ca   : > { %v876_v21 = vrot.slane %v869_v37, %v860_v16 }
 0x1cc   : > { %882 = vst.msk [vmem:[%s274_s15] sm:$0xf] %vm880_vm1, %v876_v21 }
 0x1cd   : > { %1070 = shalt.err (!%p1067_p3)
}
 0x1ce   : > { %s1071_s24 = scalar_lea.hbm %s1420_s19, 64  ;;  %s1075_s9 = scalar_lea.hbm %s1469_s7, 128 }
 0x1cf   : > { %p1072_p4 = scmp.ne.s32.totalorder %s1420_s19, %s1071_s24  ;;  %p1076_p9 = scmp.lt.u32.totalorder %s1420_s19, %s1469_s7 }
 0x1d0   : > { %p1077_p10 = scmp.lt.u32.totalorder %s1075_s9, %s1071_s24  ;;  %p1079_p12 = scmp.lt.u32.totalorder %s1071_s24, %s1420_s19 }
 0x1d1   : > { %p1073_p7 = pnand %p1072_p4, %p1207_p5 }
 0x1d2   : > { %p1078_p11 = por %p1077_p10, %p1076_p9 }
 0x1d3   : > { %p1074_p8 = pneg %p1073_p7 }
 0x1d4   : > { %p1080_p13 = por %p1079_p12, %p1078_p11 }
 0x1d6   : > { %p1081_p0 = pnand %p1080_p13, %p1074_p8 }
 0x1d8   : > { %1084 = shalt.err (!%p1081_p0)
}
 0x1d9   : > { %1004 = dma.vmem_to_hbm [thread:$0]  (%p1207_p5), %s1422_s16, 64, %s1420_s19, %s884_s20  }
 0x1da PF: > { %p1010_p1 = scmp.ge.s32.totalorder %s1119_s29, 2  ;;  %s910_s15 = sand.u32 1, %s1107_s26  }
 0x1db   : > { %s911_s17 = scalar_lea.sflag [#allocation4], %s910_s15 }
 0x1dc   : > { %p1007_p2 = pnand %p1010_p1, %p1211_p6 }
 0x1de   : > { %1102 = dma.done.wait (!%p1007_p2), %s911_s17, 64  }
 0x1df   : > { %1104 = vsyncadd (!%p1007_p2), %s911_s17, 4294967232  ;;  %p19_p3 = scmp.ge.s32.totalorder %s1194_s8, 4   ;;  %s1472_s26 = smov %s1111_s27 }
 0x1e0   : > { %s1473_s27 = smov %s1115_s28  ;;  %s1474_s28 = smov %s1205_s11 }
 0x1e1   : > { %s1475_s29 = smov %s1194_s8  ;;  %21 = sbr.rel (!%p19_p3) target bundleno = 6 (0x6), region = 83 }
 0x1e8   :  { %916 = vsyncpa [#allocation4], 1 }
 0x1e9   :  { %918 = vsyncpa [#allocation4 + $0x1], 1 }

</bundles_post_ra>
